<compile_context>
chip_gen: v5e
topology: v5e:2x2
jax: 0.10.0
libtpu: 0.0.40
codegen_flags: <defaults>
</compile_context>

<pallas_src>
import functools
import math

import jax
import jax.numpy as jnp
from jax.experimental import pallas as pl
from jax.experimental.pallas import tpu as pltpu


_NEG_BIG = -1e30  # finite stand-in for -inf in masked_fill; identical softmax
                  # for any row with at least one unmasked entry.


def _mha_kernel(q_ref, k_ref, v_ref,
                wq_ref, wk_ref, wv_ref, wp_ref,
                bq_ref, bk_ref, bv_ref, bp_ref,
                bias_ref, o_ref, ctx_ref,
                *, block_n, num_heads, head_dim, scale, has_mask):
    f32, bf16 = jnp.float32, jnp.bfloat16
    MS, E = q_ref.shape          # MS = block_n * S
    MT, _ = k_ref.shape          # MT = block_n * T
    nb = block_n
    S, T = MS // nb, MT // nb
    H, Dh = num_heads, head_dim

    # ---- Input projections: one large (nb*S, E) @ (E, E) per tensor.
    # bf16 MXU inputs, f32 accumulation; bias adds in f32.
    q_p = jnp.dot(q_ref[...], wq_ref[...], preferred_element_type=f32) + bq_ref[...]
    k_p = jnp.dot(k_ref[...], wk_ref[...], preferred_element_type=f32) + bk_ref[...]
    v_p = jnp.dot(v_ref[...], wv_ref[...], preferred_element_type=f32) + bv_ref[...]

    # Fold 1/sqrt(Dh) into q once instead of scaling every (S,T) energy tile.
    q_p = q_p * scale

    # Batched-over-batch attention views: (nb, S/T, E), bf16 for the MXU.
    qh_all = q_p.reshape(nb, S, E).astype(bf16)
    kh_all = k_p.reshape(nb, T, E).astype(bf16)
    vh_all = v_p.reshape(nb, T, E).astype(bf16)

    if has_mask:
        # Additive mask bias; broadcast hoisted out of the head loop.
        mask_bias = jnp.broadcast_to(bias_ref[...], (nb, S, T))

    # TODO(synk): with Dh < 128 a single head-batched (nb*H, S, Dh) dot_general
    # would also remove the per-head lane slices, but it needs an in-kernel
    # (S, H, Dh) -> (H, S, Dh) relayout; kept as a small static head loop that
    # writes into VMEM scratch for robust Mosaic lowering.
    for h in range(H):
        lo, hi = h * Dh, (h + 1) * Dh
        qh = qh_all[:, :, lo:hi]                              # (nb, S, Dh) bf16
        kh = kh_all[:, :, lo:hi]                              # (nb, T, Dh) bf16
        vh = vh_all[:, :, lo:hi]                              # (nb, T, Dh) bf16

        # energy = (q * scale) @ k^T, f32 accumulation on the MXU.
        energy = jnp.einsum("bsd,btd->bst", qh, kh,
                            preferred_element_type=f32)       # (nb, S, T)
        if has_mask:
            energy = energy + mask_bias

        # Numerically stable softmax with deferred normalisation.
        e_max = jnp.max(energy, axis=-1, keepdims=True)
        p = jnp.exp(energy - e_max)                           # (nb, S, T) f32
        denom = jnp.sum(p, axis=-1, keepdims=True)            # (nb, S, 1)

        # TODO(synk): training-mode attention dropout (self.attn_drop) omitted;
        # this is the eval-mode forward (dropout == identity).

        ctx_h = jnp.einsum("bst,btd->bsd", p.astype(bf16), vh,
                           preferred_element_type=f32)        # (nb, S, Dh)
        ctx_h = ctx_h * pl.reciprocal(denom, approx=True)     # EUP, not VPU divide

        # Write this head's slice into the (nb*S, E) VMEM scratch (no concat).
        ctx_ref[:, lo:hi] = ctx_h.reshape(MS, Dh)

    # ---- Output projection from the scratch: (nb*S, E) @ (E, E).
    out = jnp.dot(ctx_ref[...].astype(bf16), wp_ref[...],
                  preferred_element_type=f32) + bp_ref[...]
    o_ref[...] = out.astype(o_ref.dtype)


def _pick_block_n(N, S, T, E):
    """Largest divisor of N whose per-step activation footprint stays small."""
    bytes_per_batch = ((S + 2 * T) * E * 2        # bf16 q/k/v blocks
                       + 3 * S * E * 4)           # f32 out block + scratch-ish
    budget = 4 * 1024 * 1024                      # generous VMEM headroom
    cap = max(1, budget // max(bytes_per_batch, 1))
    for d in range(min(N, cap), 0, -1):
        if N % d == 0:
            return d
    return 1


def multi_head_attention_forward(query, key, value, params, attn_mask=None, *,
                                 num_heads, block_n=None):
    """query (N,S,E), key/value (N,T,E); params = (wq,bq,wk,bk,wv,bv,wp,bp)
    with weights laid out so that y = x @ W + b.  Returns (N,S,E)."""
    N, S, E = query.shape
    _, T, _ = key.shape
    assert key.shape == (N, T, E) and value.shape == (N, T, E)
    assert E % num_heads == 0
    head_dim = E // num_heads
    scale = 1.0 / math.sqrt(head_dim)
    out_dtype = query.dtype

    wq, bq, wk, bk, wv, bv, wp, bp = params

    if block_n is None:
        block_n = _pick_block_n(N, S, T, E)
    assert N % block_n == 0

    # bf16 MXU inputs; biases stay f32 (added after f32 accumulation).
    bf16 = jnp.bfloat16
    q2 = query.reshape(N * S, E).astype(bf16)     # pre-flattened: big M tiles
    k2 = key.reshape(N * T, E).astype(bf16)
    v2 = value.reshape(N * T, E).astype(bf16)
    wq_b, wk_b, wv_b, wp_b = (w.astype(bf16) for w in (wq, wk, wv, wp))
    as_row = lambda b: b.reshape(1, E).astype(jnp.float32)

    has_mask = attn_mask is not None
    if has_mask:
        # masked_fill(mask==0, -inf) as an additive bias, computed once here.
        mask_bias = jnp.where(attn_mask == 0, _NEG_BIG, 0.0).astype(jnp.float32)
    else:
        mask_bias = jnp.zeros((S, T), jnp.float32)

    kernel = functools.partial(
        _mha_kernel, block_n=block_n, num_heads=num_heads, head_dim=head_dim,
        scale=scale, has_mask=has_mask)

    const = lambda n: (0, 0)   # weights / biases / mask: resident across steps
    # TODO(synk): pipeline_mode=pl.Buffered(1) on the constant-index operands
    # would halve their VMEM footprint on v7x; left at the default here since
    # the demo footprint is tiny.

    out2 = pl.pallas_call(
        kernel,
        out_shape=jax.ShapeDtypeStruct((N * S, E), out_dtype),
        grid=(N // block_n,),
        in_specs=[
            pl.BlockSpec((block_n * S, E), lambda n: (n, 0)),   # query (flat)
            pl.BlockSpec((block_n * T, E), lambda n: (n, 0)),   # key   (flat)
            pl.BlockSpec((block_n * T, E), lambda n: (n, 0)),   # value (flat)
            pl.BlockSpec((E, E), const),                        # Wq
            pl.BlockSpec((E, E), const),                        # Wk
            pl.BlockSpec((E, E), const),                        # Wv
            pl.BlockSpec((E, E), const),                        # Wp
            pl.BlockSpec((1, E), const),                        # bq
            pl.BlockSpec((1, E), const),                        # bk
            pl.BlockSpec((1, E), const),                        # bv
            pl.BlockSpec((1, E), const),                        # bp
            pl.BlockSpec((S, T), const),                        # mask bias
        ],
        out_specs=pl.BlockSpec((block_n * S, E), lambda n: (n, 0)),
        scratch_shapes=[pltpu.VMEM((block_n * S, E), jnp.float32)],
        compiler_params=pltpu.CompilerParams(
            dimension_semantics=("parallel",),     # batch blocks independent
            vmem_limit_bytes=32 * 1024 * 1024,
        ),
    )(q2, k2, v2, wq_b, wk_b, wv_b, wp_b,
      as_row(bq), as_row(bk), as_row(bv), as_row(bp), mask_bias)

    # TODO(synk): for long S/T on v7x (64 MiB VMEM), add an S-tile grid axis and
    # stream K/V over T with an online-softmax accumulator (flash pattern).
    return out2.reshape(N, S, E)


def _reference_mha(query, key, value, params, attn_mask, num_heads):
    """Pure-JAX f32 reference matching the PyTorch module in eval mode."""
    wq, bq, wk, bk, wv, bv, wp, bp = params
    N, S, E = query.shape
    _, T, _ = key.shape
    Dh = E // num_heads
    qp = query @ wq + bq
    kp = key @ wk + bk
    vp = value @ wv + bv
    qh = qp.reshape(N, S, num_heads, Dh).transpose(0, 2, 1, 3)
    kh = kp.reshape(N, T, num_heads, Dh).transpose(0, 2, 1, 3)
    vh = vp.reshape(N, T, num_heads, Dh).transpose(0, 2, 1, 3)
    energy = jnp.einsum("nhsd,nhtd->nhst", qh, kh) / math.sqrt(Dh)
    if attn_mask is not None:
        energy = jnp.where(attn_mask[None, None] == 0, -jnp.inf, energy)
    attn = jax.nn.softmax(energy, axis=-1)
    out = jnp.einsum("nhst,nhtd->nhsd", attn, vh)
    out = out.transpose(0, 2, 1, 3).reshape(N, S, E)
    return out @ wp + bp


if __name__ == "__main__":
    N, S, T, E, H = 2, 8, 8, 32, 2

    root = jax.random.PRNGKey(0)
    ks = jax.random.split(root, 12)
    query = jax.random.normal(ks[0], (N, S, E), dtype=jnp.float32)
    key_in = jax.random.normal(ks[1], (N, T, E), dtype=jnp.float32)
    value_in = jax.random.normal(ks[2], (N, T, E), dtype=jnp.float32)

    w_scale = 1.0 / math.sqrt(E)
    wq = jax.random.normal(ks[3], (E, E), dtype=jnp.float32) * w_scale
    wk = jax.random.normal(ks[4], (E, E), dtype=jnp.float32) * w_scale
    wv = jax.random.normal(ks[5], (E, E), dtype=jnp.float32) * w_scale
    wp = jax.random.normal(ks[6], (E, E), dtype=jnp.float32) * w_scale
    bq = jax.random.normal(ks[7], (E,), dtype=jnp.float32) * 0.1
    bk = jax.random.normal(ks[8], (E,), dtype=jnp.float32) * 0.1
    bv = jax.random.normal(ks[9], (E,), dtype=jnp.float32) * 0.1
    bp = jax.random.normal(ks[10], (E,), dtype=jnp.float32) * 0.1
    params = (wq, bq, wk, bk, wv, bv, wp, bp)

    # Tolerance reflects bf16 MXU inputs (f32 accumulation) vs. the f32 reference.
    tol = dict(atol=1e-1, rtol=1e-1)

    # Masked (causal) cross-attention.
    causal_mask = jnp.tril(jnp.ones((S, T), dtype=jnp.float32))
    out_masked = multi_head_attention_forward(
        query, key_in, value_in, params, causal_mask, num_heads=H)
    out_masked = jax.block_until_ready(out_masked)
    assert out_masked.shape == (N, S, E) and out_masked.dtype == jnp.float32
    ref_masked = _reference_mha(query, key_in, value_in, params, causal_mask, H)
    assert jnp.allclose(out_masked, ref_masked, **tol), \
        float(jnp.max(jnp.abs(out_masked - ref_masked)))

    # Unmasked self-attention (attn_mask=None path).
    out_self = multi_head_attention_forward(
        query, query, query, params, None, num_heads=H)
    out_self = jax.block_until_ready(out_self)
    ref_self = _reference_mha(query, query, query, params, None, H)
    assert jnp.allclose(out_self, ref_self, **tol), \
        float(jnp.max(jnp.abs(out_self - ref_self)))

    print("KERNEL_OK")
</pallas_src>

<mosaic_0001>
module attributes {stable_mosaic.version = 11 : i64} {
  func.func @_mha_kernel(%arg0: i32, %arg1: memref<16x32xbf16, #tpu.memory_space<vmem>>, %arg2: memref<16x32xbf16, #tpu.memory_space<vmem>>, %arg3: memref<16x32xbf16, #tpu.memory_space<vmem>>, %arg4: memref<32x32xbf16, #tpu.memory_space<vmem>>, %arg5: memref<32x32xbf16, #tpu.memory_space<vmem>>, %arg6: memref<32x32xbf16, #tpu.memory_space<vmem>>, %arg7: memref<32x32xbf16, #tpu.memory_space<vmem>>, %arg8: memref<1x32xf32, #tpu.memory_space<vmem>>, %arg9: memref<1x32xf32, #tpu.memory_space<vmem>>, %arg10: memref<1x32xf32, #tpu.memory_space<vmem>>, %arg11: memref<1x32xf32, #tpu.memory_space<vmem>>, %arg12: memref<8x8xf32, #tpu.memory_space<vmem>>, %arg13: memref<16x32xf32, #tpu.memory_space<vmem>>, %arg14: memref<16x32xf32, #tpu.memory_space<vmem>>) attributes {dimension_semantics = [#tpu.dimension_semantics<parallel>], iteration_bounds = array<i64: 1>, scalar_prefetch = 0 : i64, scratch_operands = 1 : i64, tpu.core_type = #tpu.core_type<tc>, window_params = [{transform_indices = @transform_0, window_bounds = array<i64: 16, 32>}, {transform_indices = @transform_1, window_bounds = array<i64: 16, 32>}, {transform_indices = @transform_2, window_bounds = array<i64: 16, 32>}, {pipeline_mode = #tpu.pipeline_mode<synchronous>, transform_indices = @transform_3, window_bounds = array<i64: 32, 32>}, {pipeline_mode = #tpu.pipeline_mode<synchronous>, transform_indices = @transform_4, window_bounds = array<i64: 32, 32>}, {pipeline_mode = #tpu.pipeline_mode<synchronous>, transform_indices = @transform_5, window_bounds = array<i64: 32, 32>}, {pipeline_mode = #tpu.pipeline_mode<synchronous>, transform_indices = @transform_6, window_bounds = array<i64: 32, 32>}, {pipeline_mode = #tpu.pipeline_mode<synchronous>, transform_indices = @transform_7, window_bounds = array<i64: 1, 32>}, {pipeline_mode = #tpu.pipeline_mode<synchronous>, transform_indices = @transform_8, window_bounds = array<i64: 1, 32>}, {pipeline_mode = #tpu.pipeline_mode<synchronous>, transform_indices = @transform_9, window_bounds = array<i64: 1, 32>}, {pipeline_mode = #tpu.pipeline_mode<synchronous>, transform_indices = @transform_10, window_bounds = array<i64: 1, 32>}, {pipeline_mode = #tpu.pipeline_mode<synchronous>, transform_indices = @transform_11, window_bounds = array<i64: 8, 8>}, {transform_indices = @transform_12, window_bounds = array<i64: 16, 32>}]} {
    %c0 = arith.constant 0 : index
    %c0_0 = arith.constant 0 : index
    %0 = vector.load %arg1[%c0, %c0_0] : memref<16x32xbf16, #tpu.memory_space<vmem>>, vector<16x32xbf16>
    %c0_1 = arith.constant 0 : index
    %c0_2 = arith.constant 0 : index
    %1 = vector.load %arg4[%c0_1, %c0_2] : memref<32x32xbf16, #tpu.memory_space<vmem>>, vector<32x32xbf16>
    %cst = arith.constant dense<0.000000e+00> : vector<16x32xf32>
    %2 = tpu.matmul %0, %1, %cst {dimension_numbers = #tpu.dot_dimension_numbers<[1], [0], [0], [1], [0, 0, 1, 1], [], []>} : vector<16x32xbf16>, vector<32x32xbf16>, vector<16x32xf32> -> vector<16x32xf32>
    %c0_3 = arith.constant 0 : index
    %c0_4 = arith.constant 0 : index
    %3 = vector.load %arg8[%c0_3, %c0_4] : memref<1x32xf32, #tpu.memory_space<vmem>>, vector<1x32xf32>
    %4 = vector.broadcast %3 : vector<1x32xf32> to vector<16x32xf32>
    %5 = arith.addf %2, %4 : vector<16x32xf32>
    %c0_5 = arith.constant 0 : index
    %c0_6 = arith.constant 0 : index
    %6 = vector.load %arg2[%c0_5, %c0_6] : memref<16x32xbf16, #tpu.memory_space<vmem>>, vector<16x32xbf16>
    %c0_7 = arith.constant 0 : index
    %c0_8 = arith.constant 0 : index
    %7 = vector.load %arg5[%c0_7, %c0_8] : memref<32x32xbf16, #tpu.memory_space<vmem>>, vector<32x32xbf16>
    %cst_9 = arith.constant dense<0.000000e+00> : vector<16x32xf32>
    %8 = tpu.matmul %6, %7, %cst_9 {dimension_numbers = #tpu.dot_dimension_numbers<[1], [0], [0], [1], [0, 0, 1, 1], [], []>} : vector<16x32xbf16>, vector<32x32xbf16>, vector<16x32xf32> -> vector<16x32xf32>
    %c0_10 = arith.constant 0 : index
    %c0_11 = arith.constant 0 : index
    %9 = vector.load %arg9[%c0_10, %c0_11] : memref<1x32xf32, #tpu.memory_space<vmem>>, vector<1x32xf32>
    %10 = vector.broadcast %9 : vector<1x32xf32> to vector<16x32xf32>
    %11 = arith.addf %8, %10 : vector<16x32xf32>
    %c0_12 = arith.constant 0 : index
    %c0_13 = arith.constant 0 : index
    %12 = vector.load %arg3[%c0_12, %c0_13] : memref<16x32xbf16, #tpu.memory_space<vmem>>, vector<16x32xbf16>
    %c0_14 = arith.constant 0 : index
    %c0_15 = arith.constant 0 : index
    %13 = vector.load %arg6[%c0_14, %c0_15] : memref<32x32xbf16, #tpu.memory_space<vmem>>, vector<32x32xbf16>
    %cst_16 = arith.constant dense<0.000000e+00> : vector<16x32xf32>
    %14 = tpu.matmul %12, %13, %cst_16 {dimension_numbers = #tpu.dot_dimension_numbers<[1], [0], [0], [1], [0, 0, 1, 1], [], []>} : vector<16x32xbf16>, vector<32x32xbf16>, vector<16x32xf32> -> vector<16x32xf32>
    %c0_17 = arith.constant 0 : index
    %c0_18 = arith.constant 0 : index
    %15 = vector.load %arg10[%c0_17, %c0_18] : memref<1x32xf32, #tpu.memory_space<vmem>>, vector<1x32xf32>
    %16 = vector.broadcast %15 : vector<1x32xf32> to vector<16x32xf32>
    %17 = arith.addf %14, %16 : vector<16x32xf32>
    %cst_19 = arith.constant 2.500000e-01 : f32
    %18 = vector.broadcast %cst_19 : f32 to vector<16x32xf32>
    %19 = arith.mulf %5, %18 : vector<16x32xf32>
    %20 = vector.shape_cast %19 : vector<16x32xf32> to vector<2x8x32xf32>
    %21 = arith.truncf %20 : vector<2x8x32xf32> to vector<2x8x32xbf16>
    %22 = vector.shape_cast %11 : vector<16x32xf32> to vector<2x8x32xf32>
    %23 = arith.truncf %22 : vector<2x8x32xf32> to vector<2x8x32xbf16>
    %24 = vector.shape_cast %17 : vector<16x32xf32> to vector<2x8x32xf32>
    %25 = arith.truncf %24 : vector<2x8x32xf32> to vector<2x8x32xbf16>
    %c0_20 = arith.constant 0 : index
    %c0_21 = arith.constant 0 : index
    %26 = vector.load %arg12[%c0_20, %c0_21] : memref<8x8xf32, #tpu.memory_space<vmem>>, vector<8x8xf32>
    %27 = vector.shape_cast %26 : vector<8x8xf32> to vector<1x8x8xf32>
    %28 = vector.broadcast %27 : vector<1x8x8xf32> to vector<2x8x8xf32>
    %29 = vector.extract_strided_slice %21 {offsets = [0, 0, 0], sizes = [2, 8, 16], strides = [1, 1, 1]} : vector<2x8x32xbf16> to vector<2x8x16xbf16>
    %30 = vector.extract_strided_slice %23 {offsets = [0, 0, 0], sizes = [2, 8, 16], strides = [1, 1, 1]} : vector<2x8x32xbf16> to vector<2x8x16xbf16>
    %31 = vector.extract_strided_slice %25 {offsets = [0, 0, 0], sizes = [2, 8, 16], strides = [1, 1, 1]} : vector<2x8x32xbf16> to vector<2x8x16xbf16>
    "tpu.trace_start"() <{level = 10 : i32, message = "bsd,btd->bst"}> : () -> ()
    %cst_22 = arith.constant dense<0.000000e+00> : vector<2x8x8xf32>
    %32 = tpu.matmul %29, %30, %cst_22 {dimension_numbers = #tpu.dot_dimension_numbers<[2], [2], [1], [1], [0, 0, 0, 1, 1, 1], [0], [0]>} : vector<2x8x16xbf16>, vector<2x8x16xbf16>, vector<2x8x8xf32> -> vector<2x8x8xf32>
    "tpu.trace_stop"() : () -> ()
    %33 = arith.addf %32, %28 : vector<2x8x8xf32>
    %cst_23 = arith.constant dense<0xFF800000> : vector<2x8xf32>
    %34 = vector.multi_reduction <maximumf>, %33, %cst_23 [2] : vector<2x8x8xf32> to vector<2x8xf32>
    %35 = vector.shape_cast %34 : vector<2x8xf32> to vector<2x8x1xf32>
    %36 = vector.broadcast %35 : vector<2x8x1xf32> to vector<2x8x8xf32>
    %37 = arith.subf %33, %36 : vector<2x8x8xf32>
    %38 = math.exp %37 : vector<2x8x8xf32>
    %cst_24 = arith.constant dense<0.000000e+00> : vector<2x8xf32>
    %39 = vector.multi_reduction <add>, %38, %cst_24 [2] : vector<2x8x8xf32> to vector<2x8xf32>
    %40 = vector.shape_cast %39 : vector<2x8xf32> to vector<2x8x1xf32>
    %41 = arith.truncf %38 : vector<2x8x8xf32> to vector<2x8x8xbf16>
    "tpu.trace_start"() <{level = 10 : i32, message = "bst,btd->bsd"}> : () -> ()
    %cst_25 = arith.constant dense<0.000000e+00> : vector<2x8x16xf32>
    %42 = tpu.matmul %41, %31, %cst_25 {dimension_numbers = #tpu.dot_dimension_numbers<[2], [1], [1], [2], [0, 0, 0, 1, 1, 2], [0], [0]>} : vector<2x8x8xbf16>, vector<2x8x16xbf16>, vector<2x8x16xf32> -> vector<2x8x16xf32>
    "tpu.trace_stop"() : () -> ()
    %43 = tpu.reciprocal %40 {approx = true} : vector<2x8x1xf32> -> vector<2x8x1xf32>
    %44 = vector.broadcast %43 : vector<2x8x1xf32> to vector<2x8x16xf32>
    %45 = arith.mulf %42, %44 : vector<2x8x16xf32>
    %46 = vector.shape_cast %45 : vector<2x8x16xf32> to vector<16x16xf32>
    %c0_26 = arith.constant 0 : index
    %c0_27 = arith.constant 0 : index
    %47 = vector.load %arg14[%c0_26, %c0_27] : memref<16x32xf32, #tpu.memory_space<vmem>>, vector<16x16xf32>
    tpu.vector_store %arg14[%c0_26, %c0_27], %46 {strides = array<i32>} : memref<16x32xf32, #tpu.memory_space<vmem>>, vector<16x16xf32>,
    %48 = vector.extract_strided_slice %21 {offsets = [0, 0, 16], sizes = [2, 8, 16], strides = [1, 1, 1]} : vector<2x8x32xbf16> to vector<2x8x16xbf16>
    %49 = vector.extract_strided_slice %23 {offsets = [0, 0, 16], sizes = [2, 8, 16], strides = [1, 1, 1]} : vector<2x8x32xbf16> to vector<2x8x16xbf16>
    %50 = vector.extract_strided_slice %25 {offsets = [0, 0, 16], sizes = [2, 8, 16], strides = [1, 1, 1]} : vector<2x8x32xbf16> to vector<2x8x16xbf16>
    "tpu.trace_start"() <{level = 10 : i32, message = "bsd,btd->bst"}> : () -> ()
    %cst_28 = arith.constant dense<0.000000e+00> : vector<2x8x8xf32>
    %51 = tpu.matmul %48, %49, %cst_28 {dimension_numbers = #tpu.dot_dimension_numbers<[2], [2], [1], [1], [0, 0, 0, 1, 1, 1], [0], [0]>} : vector<2x8x16xbf16>, vector<2x8x16xbf16>, vector<2x8x8xf32> -> vector<2x8x8xf32>
    "tpu.trace_stop"() : () -> ()
    %52 = arith.addf %51, %28 : vector<2x8x8xf32>
    %cst_29 = arith.constant dense<0xFF800000> : vector<2x8xf32>
    %53 = vector.multi_reduction <maximumf>, %52, %cst_29 [2] : vector<2x8x8xf32> to vector<2x8xf32>
    %54 = vector.shape_cast %53 : vector<2x8xf32> to vector<2x8x1xf32>
    %55 = vector.broadcast %54 : vector<2x8x1xf32> to vector<2x8x8xf32>
    %56 = arith.subf %52, %55 : vector<2x8x8xf32>
    %57 = math.exp %56 : vector<2x8x8xf32>
    %cst_30 = arith.constant dense<0.000000e+00> : vector<2x8xf32>
    %58 = vector.multi_reduction <add>, %57, %cst_30 [2] : vector<2x8x8xf32> to vector<2x8xf32>
    %59 = vector.shape_cast %58 : vector<2x8xf32> to vector<2x8x1xf32>
    %60 = arith.truncf %57 : vector<2x8x8xf32> to vector<2x8x8xbf16>
    "tpu.trace_start"() <{level = 10 : i32, message = "bst,btd->bsd"}> : () -> ()
    %cst_31 = arith.constant dense<0.000000e+00> : vector<2x8x16xf32>
    %61 = tpu.matmul %60, %50, %cst_31 {dimension_numbers = #tpu.dot_dimension_numbers<[2], [1], [1], [2], [0, 0, 0, 1, 1, 2], [0], [0]>} : vector<2x8x8xbf16>, vector<2x8x16xbf16>, vector<2x8x16xf32> -> vector<2x8x16xf32>
    "tpu.trace_stop"() : () -> ()
    %62 = tpu.reciprocal %59 {approx = true} : vector<2x8x1xf32> -> vector<2x8x1xf32>
    %63 = vector.broadcast %62 : vector<2x8x1xf32> to vector<2x8x16xf32>
    %64 = arith.mulf %61, %63 : vector<2x8x16xf32>
    %65 = vector.shape_cast %64 : vector<2x8x16xf32> to vector<16x16xf32>
    %c0_32 = arith.constant 0 : index
    %c16 = arith.constant 16 : index
    %66 = vector.load %arg14[%c0_32, %c16] : memref<16x32xf32, #tpu.memory_space<vmem>>, vector<16x16xf32>
    tpu.vector_store %arg14[%c0_32, %c16], %65 {strides = array<i32>} : memref<16x32xf32, #tpu.memory_space<vmem>>, vector<16x16xf32>,
    %c0_33 = arith.constant 0 : index
    %c0_34 = arith.constant 0 : index
    %67 = vector.load %arg14[%c0_33, %c0_34] : memref<16x32xf32, #tpu.memory_space<vmem>>, vector<16x32xf32>
    %68 = arith.truncf %67 : vector<16x32xf32> to vector<16x32xbf16>
    %c0_35 = arith.constant 0 : index
    %c0_36 = arith.constant 0 : index
    %69 = vector.load %arg7[%c0_35, %c0_36] : memref<32x32xbf16, #tpu.memory_space<vmem>>, vector<32x32xbf16>
    %cst_37 = arith.constant dense<0.000000e+00> : vector<16x32xf32>
    %70 = tpu.matmul %68, %69, %cst_37 {dimension_numbers = #tpu.dot_dimension_numbers<[1], [0], [0], [1], [0, 0, 1, 1], [], []>} : vector<16x32xbf16>, vector<32x32xbf16>, vector<16x32xf32> -> vector<16x32xf32>
    %c0_38 = arith.constant 0 : index
    %c0_39 = arith.constant 0 : index
    %71 = vector.load %arg11[%c0_38, %c0_39] : memref<1x32xf32, #tpu.memory_space<vmem>>, vector<1x32xf32>
    %72 = vector.broadcast %71 : vector<1x32xf32> to vector<16x32xf32>
    %73 = arith.addf %70, %72 : vector<16x32xf32>
    %c0_40 = arith.constant 0 : index
    %c0_41 = arith.constant 0 : index
    %74 = vector.load %arg13[%c0_40, %c0_41] : memref<16x32xf32, #tpu.memory_space<vmem>>, vector<16x32xf32>
    tpu.vector_store %arg13[%c0_40, %c0_41], %73 {strides = array<i32>} : memref<16x32xf32, #tpu.memory_space<vmem>>, vector<16x32xf32>,
    return
  }
  func.func @transform_0(%arg0: i32) -> (i32, i32) {
    %c0_i32 = arith.constant 0 : i32
    %c0_i32_0 = arith.constant 0 : i32
    return %arg0, %c0_i32 : i32, i32
  }
  func.func @transform_1(%arg0: i32) -> (i32, i32) {
    %c0_i32 = arith.constant 0 : i32
    %c0_i32_0 = arith.constant 0 : i32
    return %arg0, %c0_i32 : i32, i32
  }
  func.func @transform_2(%arg0: i32) -> (i32, i32) {
    %c0_i32 = arith.constant 0 : i32
    %c0_i32_0 = arith.constant 0 : i32
    return %arg0, %c0_i32 : i32, i32
  }
  func.func @transform_3(%arg0: i32) -> (i32, i32) {
    %c0_i32 = arith.constant 0 : i32
    %c0_i32_0 = arith.constant 0 : i32
    %c0_i32_1 = arith.constant 0 : i32
    return %c0_i32, %c0_i32_0 : i32, i32
  }
  func.func @transform_4(%arg0: i32) -> (i32, i32) {
    %c0_i32 = arith.constant 0 : i32
    %c0_i32_0 = arith.constant 0 : i32
    %c0_i32_1 = arith.constant 0 : i32
    return %c0_i32, %c0_i32_0 : i32, i32
  }
  func.func @transform_5(%arg0: i32) -> (i32, i32) {
    %c0_i32 = arith.constant 0 : i32
    %c0_i32_0 = arith.constant 0 : i32
    %c0_i32_1 = arith.constant 0 : i32
    return %c0_i32, %c0_i32_0 : i32, i32
  }
  func.func @transform_6(%arg0: i32) -> (i32, i32) {
    %c0_i32 = arith.constant 0 : i32
    %c0_i32_0 = arith.constant 0 : i32
    %c0_i32_1 = arith.constant 0 : i32
    return %c0_i32, %c0_i32_0 : i32, i32
  }
  func.func @transform_7(%arg0: i32) -> (i32, i32) {
    %c0_i32 = arith.constant 0 : i32
    %c0_i32_0 = arith.constant 0 : i32
    %c0_i32_1 = arith.constant 0 : i32
    return %c0_i32, %c0_i32_0 : i32, i32
  }
  func.func @transform_8(%arg0: i32) -> (i32, i32) {
    %c0_i32 = arith.constant 0 : i32
    %c0_i32_0 = arith.constant 0 : i32
    %c0_i32_1 = arith.constant 0 : i32
    return %c0_i32, %c0_i32_0 : i32, i32
  }
  func.func @transform_9(%arg0: i32) -> (i32, i32) {
    %c0_i32 = arith.constant 0 : i32
    %c0_i32_0 = arith.constant 0 : i32
    %c0_i32_1 = arith.constant 0 : i32
    return %c0_i32, %c0_i32_0 : i32, i32
  }
  func.func @transform_10(%arg0: i32) -> (i32, i32) {
    %c0_i32 = arith.constant 0 : i32
    %c0_i32_0 = arith.constant 0 : i32
    %c0_i32_1 = arith.constant 0 : i32
    return %c0_i32, %c0_i32_0 : i32, i32
  }
  func.func @transform_11(%arg0: i32) -> (i32, i32) {
    %c0_i32 = arith.constant 0 : i32
    %c0_i32_0 = arith.constant 0 : i32
    %c0_i32_1 = arith.constant 0 : i32
    return %c0_i32, %c0_i32_0 : i32, i32
  }
  func.func @transform_12(%arg0: i32) -> (i32, i32) {
    %c0_i32 = arith.constant 0 : i32
    %c0_i32_0 = arith.constant 0 : i32
    return %arg0, %c0_i32 : i32, i32
  }
}

</mosaic_0001>

<bundles_post_ra>
// kernel: tpu_custom_call.1
= control target key start
LH: loop header
LB: loop body
LE: loop exit
PB: predicated region body
PF: predicated region fallthrough
CT: control target
= control target key end

     0   :  { %17 = vsyncpa [#allocation4], 0  ;;  %s1166_s0 = inlined_call_operand.hbm [shape: bf16[16,32], index: 0, kind: input, shape index: {}]   ;;  %s1167_s1 = inlined_call_operand.hbm [shape: bf16[16,32], index: 1, kind: input, shape index: {}]   ;;  %s1168_s2 = inlined_call_operand.hbm [shape: bf16[16,32], index: 2, kind: input, shape index: {}]   ;;  %s1169_s3 = inlined_call_operand.hbm [shape: bf16[32,32], index: 3, kind: input, shape index: {}]   ;;  %s1170_s4 = inlined_call_operand.hbm [shape: bf16[32,32], index: 4, kind: input, shape index: {}]   ;;  %s1171_s5 = inlined_call_operand.hbm [shape: bf16[32,32], index: 5, kind: input, shape index: {}]   ;;  %s1172_s6 = inlined_call_operand.hbm [shape: bf16[32,32], index: 6, kind: input, shape index: {}]   ;;  %s1173_s7 = inlined_call_operand.vmem [shape: f32[1,32], index: 7, kind: input, shape index: {}]   ;;  %s1174_s8 = inlined_call_operand.vmem [shape: f32[1,32], index: 8, kind: input, shape index: {}]   ;;  %s1175_s9 = inlined_call_operand.hbm [shape: f32[1,32], index: 9, kind: input, shape index: {}]   ;;  %s1176_s10 = inlined_call_operand.hbm [shape: f32[1,32], index: 10, kind: input, shape index: {}]   ;;  %s1177_s11 = inlined_call_operand.vmem [shape: f32[8,8], index: 11, kind: input, shape index: {}]   ;;  %s1178_s12 = inlined_call_operand.hbm [shape: f32[16,32], index: 12, kind: output, shape index: {}]  }
   0x1   :  { %18 = vsyncpa [#allocation7], 0 }
   0x2   :  { %19 = vsyncpa [#allocation10], 0 }
   0x3   :  { %20 = vsyncpa [#allocation13], 0 }
   0x4   :  { %21 = vsyncpa [#allocation16], 0 }
   0x5   :  { %22 = vsyncpa [#allocation5], 0  ;;  %s40_s23 = sshll.u32 %s1167_s1, 4  ;;  %s987_s24 = smov [#allocation6]   ;;  %s41_s23 = int_to_ptr.hbm [resolvable:$true] %s40_s23 }
   0x6   :  { %s42_s25 = sshll.u32 %s987_s24, 4  ;;  %s66_s28 = sshll.u32 %s1169_s3, 4  ;;  %s43_s25 = int_to_ptr.vmem [resolvable:$true] %s42_s25  ;;  %s67_s28 = int_to_ptr.hbm [resolvable:$true] %s66_s28 }
   0x7   :  { %s988_s29 = smov 64   ;;  %s989_s30 = smov 4  }
   0x8   :  { %48 = dma.hbm_to_vmem [thread:$0]  %s41_s23, 128, %s43_s25, [#allocation7], %s988_s29, %s988_s29, %s989_s30  }
   0x9   :  { %s990_s13 = smov [#allocation9]   ;;  %s92_s1 = sshll.u32 %s1171_s5, 4  ;;  %s93_s1 = int_to_ptr.hbm [resolvable:$true] %s92_s1 }
   0xa   :  { %s68_s14 = sshll.u32 %s990_s13, 4  ;;  %s123_s18 = sshll.u32 %s1175_s9, 4  ;;  %s69_s14 = int_to_ptr.vmem [resolvable:$true] %s68_s14  ;;  %s124_s18 = int_to_ptr.hbm [resolvable:$true] %s123_s18 }
   0xb   :  { %74 = dma.hbm_to_vmem [thread:$0]  %s67_s28, 256, %s69_s14, [#allocation10], %s988_s29, %s988_s29, %s989_s30  }
   0xc   :  { %s991_s19 = smov [#allocation12]   ;;  %s992_s21 = smov [#allocation15]  }
   0xd   :  { %s94_s20 = sshll.u32 %s991_s19, 4  ;;  %s125_s5 = sshll.u32 %s992_s21, 4  ;;  %s95_s20 = int_to_ptr.vmem [resolvable:$true] %s94_s20  ;;  %s126_s5 = int_to_ptr.vmem [resolvable:$true] %s125_s5 }
   0xe   :  { %100 = dma.hbm_to_vmem [thread:$0]  %s93_s1, 256, %s95_s20, [#allocation13], %s988_s29, %s988_s29, %s989_s30  }
   0xf   :  { %s27_s24 = sshll.u32 %s1166_s0, 4  ;;  %s53_s9 = sshll.u32 %s1168_s2, 4  ;;  %s28_s24 = int_to_ptr.hbm [resolvable:$true] %s27_s24  ;;  %s54_s9 = int_to_ptr.hbm [resolvable:$true] %s53_s9 }
  0x10   :  { %128 = dma.hbm_to_vmem [thread:$0]  %s124_s18, 16, %s126_s5, [#allocation16]  }
  0x11   :  { %s993_s27 = smov [#allocation3]   ;;  %s994_s13 = smov [#allocation8]  }
  0x12   :  { %s29_s28 = sshll.u32 %s993_s27, 4  ;;  %s55_s14 = sshll.u32 %s994_s13, 4  ;;  %s30_s28 = int_to_ptr.vmem [resolvable:$true] %s29_s28  ;;  %s56_s14 = int_to_ptr.vmem [resolvable:$true] %s55_s14 }
  0x13   :  { %35 = dma.hbm_to_vmem [thread:$0]  %s28_s24, 128, %s30_s28, [#allocation4], %s988_s29, %s988_s29, %s989_s30  }
  0x14   :  { %s79_s0 = sshll.u32 %s1170_s4, 4  ;;  %s105_s3 = sshll.u32 %s1172_s6, 4  ;;  %s80_s0 = int_to_ptr.hbm [resolvable:$true] %s79_s0  ;;  %s106_s3 = int_to_ptr.hbm [resolvable:$true] %s105_s3 }
  0x15   :  { %61 = dma.hbm_to_vmem [thread:$0]  %s54_s9, 128, %s56_s14, [#allocation7], %s988_s29, %s988_s29, %s989_s30  }
  0x16   :  { %s995_s17 = smov [#allocation11]   ;;  %s996_s19 = smov [#allocation14]  }
  0x17   :  { %s81_s18 = sshll.u32 %s995_s17, 4  ;;  %s107_s4 = sshll.u32 %s996_s19, 4  ;;  %s82_s18 = int_to_ptr.vmem [resolvable:$true] %s81_s18  ;;  %s108_s4 = int_to_ptr.vmem [resolvable:$true] %s107_s4 }
  0x18   :  { %87 = dma.hbm_to_vmem [thread:$0]  %s80_s0, 256, %s82_s18, [#allocation10], %s988_s29, %s988_s29, %s989_s30  }
  0x19   :  { %s134_s5 = sshll.u32 %s1176_s10, 4  ;;  %s997_s6 = smov [#allocation17]   ;;  %s135_s5 = int_to_ptr.hbm [resolvable:$true] %s134_s5 }
  0x1a   :  { %113 = dma.hbm_to_vmem [thread:$0]  %s106_s3, 256, %s108_s4, [#allocation13], %s988_s29, %s988_s29, %s989_s30  }
  0x1b   :  { %s136_s22 = sshll.u32 %s997_s6, 4  ;;  %s137_s22 = int_to_ptr.vmem [resolvable:$true] %s136_s22 }
  0x1c   :  { %139 = dma.hbm_to_vmem [thread:$0]  %s135_s5, 16, %s137_s22, [#allocation16]  }
  0x1d   :  { %975 = dma.done.wait [#allocation4], 128  }
  0x1e   :  { %976 = vsyncadd [#allocation4], 4294967168 }
  0x1f   :  { %977 = dma.done.wait [#allocation7], 256  }
  0x20   :  { %978 = vsyncadd [#allocation7], 4294967040 }
  0x21   :  { %979 = dma.done.wait [#allocation10], 512  }
  0x22   :  { %980 = vsyncadd [#allocation10], 4294966784 }
  0x23   :  { %981 = dma.done.wait [#allocation13], 512  }
  0x24   :  { %982 = vsyncadd [#allocation13], 4294966784 }
  0x25   :  { %983 = dma.done.wait [#allocation16], 32  }
  0x26   :  { %984 = vsyncadd [#allocation16], 4294967264  ;;  %v693_v0 = vld [vmem:[#allocation11 + $0x8] sm:$0xff]  ;;  %v690_v1 = vld [vmem:[#allocation9 + $0x8] sm:$0xff]  ;;  %vm206_vm0 = vcmask 261120   ;;  %vm321_vm1 = vcmask 130048  }
  0x27   :  { %v692_v2 = vld [vmem:[#allocation11] sm:$0xff]  ;;  %260 = vmatpush.bf16.msra.mxu1 %v693_v0  ;;  %216 = vmatpush.bf16.msra.mxu0 %v690_v1  ;;  %v689_v3 = vld [vmem:[#allocation9] sm:$0xff]  ;;  %v688_v5 = vld [vmem:[#allocation3] sm:$0xff]  ;;  %vm360_vm2 = vcmask 64512   ;;  %vm384_vm3 = vcmask 1043456   ;;  %vm564_vm4 = vcmask 261248  }
  0x28   :  { %v691_v4 = vld [vmem:[#allocation6] sm:$0xff]  ;;  %v715_v6 = vld [vmem:[%s1174_s8] ss:$0 sm:$0xff]  ;;  %s998_s8 = smov 112   ;;  %v696_v32 = vld [vmem:[#allocation12 + $0x8] sm:$0xff]  ;;  %s1000_s25 = smov [#allocation18]  }
  0x29   :  { %v716_v7 = vld [vmem:[%s1173_s7] ss:$0 sm:$0xff]  ;;  %304 = vmatpush.bf16.msra.mxu2 %v696_v32  ;;  %v695_v33 = vld [vmem:[#allocation12] sm:$0xff]  ;;  %s613_s26 = sshll.u32 %s1000_s25, 4  ;;  %s615_s28 = sshll.u32 %s1178_s12, 4  ;;  %s614_s26 = int_to_ptr.vmem [resolvable:$true] %s613_s26  ;;  %s616_s28 = int_to_ptr.hbm [resolvable:$true] %s615_s28 }
  0x2a   :  { %v694_v34 = vld [vmem:[#allocation8] sm:$0xff]  ;;  %v717_v50 = vld [vmem:[#allocation15] ss:$0 sm:$0xff]  ;;  %s1001_s13 = smov 128   ;;  %s1002_s14 = smov 8  }
  0x2b   :  { %261 = vmatpush.bf16.msra.mxu1 %v692_v2  ;;  %217 = vmatpush.bf16.msra.mxu0 %v689_v3  ;;  %v320_v41 = vld [vmem:[%s1177_s11] sm:$0xff]  ;;  %s999_s11 = smov 16  }
  0x2d   :  { %305 = vmatpush.bf16.msra.mxu2 %v695_v33 }
  0x2e   :  { %657 = vmatmul.msk.bf16.vlgmr.msra.gmra.mxu1 %vm206_vm0, %v691_v4  ;;  %644 = vmatmul.msk.bf16.vlgmr.msra.gmra.mxu0 %vm206_vm0, %v688_v5 }
  0x30   :  { %670 = vmatmul.msk.bf16.vlgmr.msra.gmra.mxu2 %vm206_vm0, %v694_v34 }
  0xab   :  { %v263_v8 = vpop.f32.mrf.mxu1  ;;  %v219_v9 = vpop.f32.mrf.mxu0 }
  0xac   :  { %v264_v10 = vadd.f32 %v715_v6, %v263_v8  ;;  %v220_v11 = vadd.f32 %v716_v7, %v219_v9 }
  0xae   :  { %v316_v12 = vpack.c.bf16 %v264_v10, %v264_v10  ;;  %v312_v13 = vmul.f32 0.25, %v220_v11 }
  0xb0   :  { %v314_v14 = vpack.c.bf16 %v312_v13, %v312_v13  ;;  %v326_v15 = vsel %vm321_vm1, %v316_v12, 0  ;;  %v432_v16 = vunpack.c.l.b16 %v316_v12 }
  0xb1   :  { %335 = vmatpush.bf16.xpose.msra.mxu3 %v326_v15 }
  0xb2   :  { %v433_v17 = vpack.c.b16 %v432_v16, %v432_v16  ;;  %v427_v18 = vunpack.c.l.b16 %v314_v14 }
  0xb3   :  { %v265_v19 = vpop.f32.mrf.mxu1  ;;  %v221_v20 = vpop.f32.mrf.mxu0 }
  0xb4   :  { %v266_v21 = vadd.f32 %v715_v6, %v265_v19  ;;  %434 = vrot.lane.b32.xlu0 %v433_v17, %s998_s8  ;;  %v222_v22 = vadd.f32 %v716_v7, %v221_v20  ;;  %v428_v23 = vpack.c.b16 %v427_v18, %v427_v18  ;;  %v307_v51 = vpop.f32.mrf.mxu2 }
  0xb5   :  { %v308_v52 = vadd.f32 %v717_v50, %v307_v51 }
  0xb6   :  { %v317_v24 = vpack.c.bf16 %v266_v21, %v266_v21  ;;  %v313_v25 = vmul.f32 0.25, %v222_v22  ;;  %429 = vrot.lane.b32.xlu1 %v428_v23, %s998_s8 }
  0xb7   :  { %v318_v53 = vpack.c.bf16 %v308_v52, %v308_v52 }
  0xb8   :  { %v461_v26 = vunpack.c.l.b16 %v317_v24  ;;  %671 = vmatmul.msk.bf16.vlgmr.msra.gmra.mxu3 %vm321_vm1, %v314_v14  ;;  %v315_v27 = vpack.c.bf16 %v313_v25, %v313_v25  ;;  %v345_v28 = vsel %vm321_vm1, %v317_v24, 0 }
  0xb9   :  { %354 = vmatpush.bf16.xpose.msrb.mxu0 %v345_v28  ;;  %v386_v54 = vsel %vm384_vm3, %v318_v53, 0  ;;  %v505_v61 = vunpack.c.l.b16 %v318_v53 }
  0xba   :  { %v462_v29 = vpack.c.b16 %v461_v26, %v461_v26  ;;  %v456_v30 = vunpack.c.l.b16 %v315_v27  ;;  %395 = vmatpush.bf16.msrb.mxu1 %v386_v54 }
  0xbb   :  { %v506_v62 = vpack.c.b16 %v505_v61, %v505_v61 }
  0xbc   :  { %463 = vrot.lane.b32.xlu0 %v462_v29, %s998_s8  ;;  %v457_v31 = vpack.c.b16 %v456_v30, %v456_v30  ;;  %v309_v55 = vpop.f32.mrf.mxu2 }
  0xbd   :  { %v310_v56 = vadd.f32 %v717_v50, %v309_v55  ;;  %v698_v55 = vld [vmem:[#allocation14 + $0x8] sm:$0xff] }
  0xbe   :  { %458 = vrot.lane.b32.xlu1 %v457_v31, %s998_s8 }
  0xbf   :  { %v319_v57 = vpack.c.bf16 %v310_v56, %v310_v56  ;;  %v697_v56 = vld [vmem:[#allocation14] sm:$0xff] }
  0xc0   :  { %672 = vmatmul.msk.bf16.vlgmr.msrb.gmra.mxu0 %vm321_vm1, %v315_v27 }
  0xc1   :  { %v529_v58 = vunpack.c.l.b16 %v319_v57  ;;  %v405_v59 = vsel %vm384_vm3, %v319_v57, 0 }
  0xc2   :  { %414 = vmatpush.bf16.msrb.mxu2 %v405_v59 }
  0xc3   :  { %v530_v60 = vpack.c.b16 %v529_v58, %v529_v58 }
 0x126   :  { %v435_v35 = vpop.permute.xlu0 %434 }
 0x127   :  { %v440_v36 = vsel %vm321_vm1, %v435_v35, 0 }
 0x128   :  { %449 = vmatpush.bf16.xpose.msrb.mxu3 %v440_v36  ;;  %v430_v37 = vpop.permute.xlu1 %429 }
 0x12e   :  { %v464_v38 = vpop.permute.xlu0 %463 }
 0x12f   :  { %v469_v39 = vsel %vm321_vm1, %v464_v38, 0  ;;  %675 = vmatmul.msk.bf16.vlgmr.msrb.gmra.mxu3 %vm321_vm1, %v430_v37 }
 0x130   :  { %478 = vmatpush.bf16.xpose.msra.mxu0 %v469_v39  ;;  %v459_v40 = vpop.permute.xlu1 %458  ;;  %599 = vmatpush.bf16.msra.mxu3 %v698_v55 }
 0x134   :  { %600 = vmatpush.bf16.msra.mxu3 %v697_v56 }
 0x137   :  { %676 = vmatmul.msk.bf16.vlgmr.msra.gmra.mxu0 %vm321_vm1, %v459_v40 }
 0x13b   :  { %v337_v42 = vpop.f32.mrf.mxu3 }
 0x13c   :  { %v338_v43 = vadd.f32 %v337_v42, %v320_v41 }
 0x13d   :  { %v356_v44 = vpop.f32.mrf.mxu0 }
 0x13e   :  { %v361_v45 = vsel %vm360_vm2, %v338_v43, -inf  ;;  %v357_v46 = vadd.f32 %v356_v44, %v320_v41 }
 0x13f   :  { %362 = vmax.xlane.f32.xlu2 %v361_v45 }
 0x140   :  { %v364_v49 = vsel %vm360_vm2, %v357_v46, -inf }
 0x143   :  { %v339_v47 = vpop.f32.mrf.mxu3 }
 0x145   :  { %v358_v48 = vpop.f32.mrf.mxu0 }
 0x147   :  { %365 = vmax.xlane.f32.xlu2 %v364_v49 }
 0x15f   :  { %531 = vrot.lane.b32.xlu2 %v530_v60, %s998_s8 }
 0x167   :  { %507 = vrot.lane.b32.xlu2 %v506_v62, %s998_s8  ;;  %v718_v62 = vld [vmem:[#allocation17] ss:$0 sm:$0xff] }
 0x1b2   :  { %v451_v63 = vpop.f32.mrf.mxu3  ;;  %v363_v0 = vpop.xlane.xlu2 %362 }
 0x1b3   :  { %v452_v1 = vadd.f32 %v451_v63, %v320_v41  ;;  %v367_v2 = vsub.f32 %v338_v43, %v363_v0 }
 0x1b4   :  { %v480_v3 = vpop.f32.mrf.mxu0 }
 0x1b5   :  { %v369_v4 = vmul.f32 1.442695, %v367_v2  ;;  %v481_v5 = vadd.f32 %v480_v3, %v320_v41  ;;  %v484_v6 = vsel %vm360_vm2, %v452_v1, -inf }
 0x1b6   :  { %485 = vmax.xlane.f32.xlu1 %v484_v6 }
 0x1b7   :  { %719 = vpow2.f32 %v369_v4  ;;  %v487_v7 = vsel %vm360_vm2, %v481_v5, -inf }
 0x1b8   :  { %488 = vmax.xlane.f32.xlu0 %v487_v7 }
 0x1ba   :  { %v366_v8 = vpop.xlane.xlu2 %365  ;;  %v453_v9 = vpop.f32.mrf.mxu3 }
 0x1bb   :  { %v368_v10 = vsub.f32 %v357_v46, %v366_v8 }
 0x1bc   :  { %v482_v11 = vpop.f32.mrf.mxu0 }
 0x1bd   :  { %v720_v12 = vpop.eup %719  ;;  %v371_v13 = vmul.f32 1.442695, %v368_v10 }
 0x1be   :  { %v373_v14 = vsel %vm360_vm2, %v720_v12, 0.0  ;;  %v379_v15 = vpack.c.bf16 %v720_v12, %v720_v12 }
 0x1bf   :  { %721 = vpow2.f32 %v371_v13  ;;  %374 = vadd.xlane.f32.xlu1 %v373_v14 }
 0x1c0   :  { %673 = vmatmul.msk.bf16.vlgmr.msrb.gmra.mxu1 %vm360_vm2, %v379_v15 }
 0x1c2   :  { %v532_v18 = vpop.permute.xlu2 %531 }
 0x1c3   :  { %v537_v19 = vsel %vm384_vm3, %v532_v18, 0 }
 0x1c4   :  { %546 = vmatpush.bf16.msra.mxu2 %v537_v19 }
 0x1c5   :  { %v722_v16 = vpop.eup %721 }
 0x1c6   :  { %v380_v17 = vpack.c.bf16 %v722_v16, %v722_v16  ;;  %v376_v38 = vsel %vm360_vm2, %v722_v16, 0.0 }
 0x1c8   :  { %674 = vmatmul.msk.bf16.vlgmr.msrb.gmra.mxu2 %vm360_vm2, %v380_v17 }
 0x1ca   :  { %v508_v20 = vpop.permute.xlu2 %507 }
 0x1cb   :  { %v513_v21 = vsel %vm384_vm3, %v508_v20, 0 }
 0x1cc   :  { %522 = vmatpush.bf16.msra.mxu1 %v513_v21 }
 0x229   :  { %v486_v22 = vpop.xlane.xlu1 %485 }
 0x22a   :  { %v490_v23 = vsub.f32 %v452_v1, %v486_v22 }
 0x22b   :  { %v489_v24 = vpop.xlane.xlu0 %488 }
 0x22c   :  { %v492_v25 = vmul.f32 1.442695, %v490_v23  ;;  %v491_v26 = vsub.f32 %v481_v5, %v489_v24 }
 0x22e   :  { %723 = vpow2.f32 %v492_v25  ;;  %v494_v27 = vmul.f32 1.442695, %v491_v26 }
 0x230   :  { %725 = vpow2.f32 %v494_v27 }
 0x232   :  { %v375_v29 = vpop.xlane.xlu1 %374 }
 0x233   :  { %727 = vrcp.f32 %v375_v29 }
 0x234   :  { %v724_v28 = vpop.eup %723 }
 0x235   :  { %v502_v30 = vpack.c.bf16 %v724_v28, %v724_v28  ;;  %v496_v31 = vsel %vm360_vm2, %v724_v28, 0.0 }
 0x236   :  { %v726_v32 = vpop.eup %725  ;;  %497 = vadd.xlane.f32.xlu2 %v496_v31 }
 0x237   :  { %v503_v33 = vpack.c.bf16 %v726_v32, %v726_v32  ;;  %677 = vmatmul.msk.bf16.vlgmr.msra.gmra.mxu1 %vm360_vm2, %v502_v30  ;;  %v499_v34 = vsel %vm360_vm2, %v726_v32, 0.0 }
 0x238   :  { %500 = vadd.xlane.f32.xlu0 %v499_v34 }
 0x239   :  { %678 = vmatmul.msk.bf16.vlgmr.msra.gmra.mxu2 %vm360_vm2, %v503_v33  ;;  %v728_v35 = vpop.eup %727 }
 0x23d   :  { %v397_v36 = vpop.f32.mrf.mxu1 }
 0x23e   :  { %v422_v37 = vmul.f32 %v728_v35, %v397_v36 }
 0x240   :  { %424 = vst.msk [vmem:[#allocation2] sm:$0xff] %vm321_vm1, %v422_v37  ;;  %377 = vadd.xlane.f32.xlu0 %v376_v38 }
 0x245   :  { %v399_v39 = vpop.f32.mrf.mxu1 }
 0x24b   :  { %v416_v40 = vpop.f32.mrf.mxu2 }
 0x253   :  { %v418_v41 = vpop.f32.mrf.mxu2 }
 0x2a9   :  { %v498_v42 = vpop.xlane.xlu2 %497 }
 0x2aa   :  { %729 = vrcp.f32 %v498_v42 }
 0x2ab   :  { %v501_v43 = vpop.xlane.xlu0 %500 }
 0x2b0   :  { %v730_v45 = vpop.eup %729 }
 0x2b3   :  { %v378_v44 = vpop.xlane.xlu0 %377 }
 0x2b4   :  { %731 = vrcp.f32 %v378_v44  ;;  %v524_v46 = vpop.f32.mrf.mxu1 }
 0x2b5   :  { %v554_v47 = vmul.f32 %v730_v45, %v524_v46  ;;  %733 = vrcp.f32 %v501_v43 }
 0x2b7   :  { %558 = vrot.lane.b32.xlu1 %v554_v47, %s999_s11 }
 0x2ba   :  { %v732_v48 = vpop.eup %731 }
 0x2bb   :  { %v423_v49 = vmul.f32 %v732_v48, %v416_v40  ;;  %v734_v50 = vpop.eup %733 }
 0x2bc   :  { %v526_v51 = vpop.f32.mrf.mxu1  ;;  %v548_v52 = vpop.f32.mrf.mxu2 }
 0x2bd   :  { %425 = vst.msk [vmem:[#allocation2 + $0x8] sm:$0xff] %vm321_vm1, %v423_v49  ;;  %v555_v53 = vmul.f32 %v734_v50, %v548_v52 }
 0x2bf   :  { %560 = vrot.lane.b32.xlu0 %v555_v53, %s999_s11 }
 0x2c4   :  { %v550_v54 = vpop.f32.mrf.mxu2 }
 0x329   :  { %v559_v57 = vpop.permute.xlu1 %558 }
 0x32a   :  { %565 = vst.msk [vmem:[#allocation2] sm:$0xff] %vm564_vm4, %v559_v57 }
 0x331   :  { %v561_v58 = vpop.permute.xlu0 %560  ;;  %v567_v59 = vld [vmem:[#allocation2] sm:$0xff] }
 0x332   :  { %566 = vst.msk [vmem:[#allocation2 + $0x8] sm:$0xff] %vm564_vm4, %v561_v58 }
 0x339   :  { %v568_v60 = vld [vmem:[#allocation2 + $0x8] sm:$0xff] }
 0x33a   :  { %v569_v61 = vpack.c.bf16 %v568_v60, %v567_v59 }
 0x33c   :  { %687 = vmatmul.msk.bf16.vlgmr.msra.gmra.mxu3 %vm206_vm0, %v569_v61 }
 0x3bf   :  { %v602_v63 = vpop.f32.mrf.mxu3 }
 0x3c0   :  { %v603_v0 = vadd.f32 %v718_v62, %v602_v63 }
 0x3c2   :  { %607 = vst.msk [vmem:[#allocation18] sm:$0xff] %vm206_vm0, %v603_v0 }
 0x3c7   :  { %v604_v1 = vpop.f32.mrf.mxu3 }
 0x3c8   :  { %v605_v2 = vadd.f32 %v718_v62, %v604_v1 }
 0x3ca   :  { %608 = vst.msk [vmem:[#allocation18 + $0x8] sm:$0xff] %vm206_vm0, %v605_v2 }
 0x3cb   :  { %621 = dma.vmem_to_hbm [thread:$0]  %s614_s26, 256, %s616_s28, [#allocation5], %s1001_s13, %s1001_s13, %s1002_s14  }
 0x3cc   :  { %985 = dma.done.wait [#allocation5], 256  }
 0x3cd   :  { %986 = vsyncadd [#allocation5], 4294967040 }
 0x3ce   :  { %626 = vsyncpa [#allocation4], 1 }
 0x3cf   :  { %627 = vsyncpa [#allocation7], 1 }
 0x3d0   :  { %628 = vsyncpa [#allocation10], 1 }
 0x3d1   :  { %629 = vsyncpa [#allocation13], 1 }
 0x3d2   :  { %630 = vsyncpa [#allocation16], 1 }
 0x3d3   :  { %631 = vsyncpa [#allocation5], 1 }

</bundles_post_ra>
